<compile_context>
chip_gen: v6e
topology: v6e:2x2x1
jax: 0.10.0
libtpu: 0.0.40
codegen_flags: <defaults>
</compile_context>

<pallas_src>
import functools

import jax
import jax.numpy as jnp
from jax.experimental import pallas as pl
from jax.experimental.pallas import tpu as pltpu

_LANE = 128


def _combined_loss_kernel(x_ref, t_ref, inter_ref, psum_ref, tsum_ref, ce_ref,
                          *, L, ragged):
    l = pl.program_id(1)

    @pl.when(l == 0)
    def _():
        inter_ref[...] = jnp.zeros_like(inter_ref)
        psum_ref[...] = jnp.zeros_like(psum_ref)
        tsum_ref[...] = jnp.zeros_like(tsum_ref)
        ce_ref[...] = jnp.zeros_like(ce_ref)

    C = x_ref.shape[1]
    TR = x_ref.shape[2]

    x = x_ref[0].astype(jnp.float32)     # (C, TR, 128)  classes on slow axis
    t = t_ref[0].astype(jnp.int32)       # (TR, 128)

    if ragged:
        # Tail of the last tile (and any lane padding) contains unspecified
        # data; mask by global pixel index, not by target value.
        row = jax.lax.broadcasted_iota(jnp.int32, (TR, _LANE), 0)
        lane = jax.lax.broadcasted_iota(jnp.int32, (TR, _LANE), 1)
        pix = (l * TR + row) * _LANE + lane
        validb = pix < L                              # (TR, 128) bool
        x = jnp.where(validb[None], x, 0.0)           # sanitize before exp
        t = jnp.where(validb, t, -1)                  # padded pixels -> no class
        valid_f = validb.astype(jnp.float32)

    # Softmax over the class axis: pure elementwise work across C dense slabs.
    m = jnp.max(x, axis=0, keepdims=True)             # (1, TR, 128)
    shifted = x - m                                    # (C, TR, 128)
    e = jnp.exp(shifted)                               # C EUP ops / pixel
    sum_e = jnp.sum(e, axis=0, keepdims=True)          # (1, TR, 128)
    inv = 1.0 / sum_e                                  # exact (1e-5 tolerance)
    p = e * inv                                        # softmax probs
    lse = jnp.log(sum_e)                               # 1 EUP op / pixel
    nlp = lse - shifted                                # -log_softmax(x)

    # One-hot via iota compare (padded pixels have t == -1 -> all zero).
    cls = jax.lax.broadcasted_iota(jnp.int32, (C, TR, _LANE), 0)
    oh = (cls == t[None]).astype(jnp.float32)          # (C, TR, 128)

    pv = p * valid_f[None] if ragged else p

    # Lane-dense per-class partial sums: reduce only the sublane (row) axis,
    # keep 128 lane partials; final reduction happens in the scalar glue.
    inter_ref[0] += jnp.sum(pv * oh, axis=1)           # (C, 128)
    psum_ref[0] += jnp.sum(pv, axis=1)
    tsum_ref[0] += jnp.sum(oh, axis=1)
    ce_ref[0] += jnp.sum(oh * nlp, axis=1)


def combined_loss(logits_nchw, targets, num_classes=2, smooth=1e-6, alpha=0.5,
                  tile_rows=512):
    B, C, H, W = logits_nchw.shape
    assert C == num_classes
    L = H * W

    # Free layout change: NCHW -> (B, C, L) -> (B, C, R, 128). Only pads when
    # L is not lane aligned (< 128 extra pixels); never pads to tile multiples.
    Lp = ((L + _LANE - 1) // _LANE) * _LANE
    x = logits_nchw.reshape(B, C, L)
    t = targets.reshape(B, L)
    if Lp != L:
        x = jnp.pad(x, ((0, 0), (0, 0), (0, Lp - L)))
        t = jnp.pad(t, ((0, 0), (0, Lp - L)))
    R = Lp // _LANE
    x = x.reshape(B, C, R, _LANE)          # native dtype, no astype in wrapper
    t = t.reshape(B, R, _LANE)

    # Pixel tile: TR rows x 128 lanes (default 64K pixels). Edge blocks handle
    # R % TR != 0; in-kernel index masking handles the ragged tail.
    TR = R if R <= tile_rows else tile_rows            # tile_rows % 8 == 0
    num_l = pl.cdiv(R, TR)
    ragged = (Lp != L) or (R % TR != 0)

    kernel = functools.partial(_combined_loss_kernel, L=L, ragged=ragged)

    acc_shape = jax.ShapeDtypeStruct((B, C, _LANE), jnp.float32)
    acc_spec = pl.BlockSpec((1, C, _LANE), lambda b, l: (b, 0, 0))

    inter, psum, tsum, ce = pl.pallas_call(
        kernel,
        out_shape=(acc_shape, acc_shape, acc_shape, acc_shape),
        grid_spec=pltpu.PrefetchScalarGridSpec(
            num_scalar_prefetch=0,
            grid=(B, num_l),
            in_specs=[
                pl.BlockSpec((1, C, TR, _LANE), lambda b, l: (b, 0, l, 0)),
                pl.BlockSpec((1, TR, _LANE), lambda b, l: (b, l, 0)),
            ],
            out_specs=[acc_spec, acc_spec, acc_spec, acc_spec],
        ),
        compiler_params=pltpu.CompilerParams(
            dimension_semantics=("parallel", "arbitrary"),
            vmem_limit_bytes=32 * 1024 * 1024,   # tiny footprint; safe on v7x
        ),
    )(x, t)
    # TODO(synk): no 2-way pixel split for v7x dual-TC at batch size 1; batch
    # axis alone is the "parallel" axis.

    # Scalar glue: fold batch + lane partials, dice formula, mean CE, blend.
    inter_c = inter.sum(axis=(0, 2))     # (C,)
    psum_c = psum.sum(axis=(0, 2))
    tsum_c = tsum.sum(axis=(0, 2))
    ce_sum = ce.sum()

    dice_per_class = 1.0 - (2.0 * inter_c + smooth) / (psum_c + tsum_c + smooth)
    dice = jnp.sum(dice_per_class) / num_classes
    ce_mean = ce_sum / (B * L)
    return alpha * dice + (1.0 - alpha) * ce_mean


def _reference_loss(logits_nchw, targets, num_classes=2, smooth=1e-6, alpha=0.5):
    # pure-JAX reference mirroring the PyTorch module
    p = jax.nn.softmax(logits_nchw, axis=1)                           # (B,C,H,W)
    onehot = jax.nn.one_hot(targets, num_classes, dtype=jnp.float32)  # (B,H,W,C)
    onehot = jnp.transpose(onehot, (0, 3, 1, 2))                      # (B,C,H,W)
    dice_loss = 0.0
    for i in range(num_classes):
        pf = p[:, i].reshape(-1)
        tf = onehot[:, i].reshape(-1)
        inter = jnp.sum(pf * tf)
        dice = (2 * inter + smooth) / (jnp.sum(pf) + jnp.sum(tf) + smooth)
        dice_loss += 1.0 - dice
    dice_loss = dice_loss / num_classes
    logp = jax.nn.log_softmax(logits_nchw, axis=1)
    ce = -jnp.mean(jnp.take_along_axis(logp, targets[:, None], axis=1))
    return alpha * dice_loss + (1.0 - alpha) * ce


if __name__ == "__main__":
    key = jax.random.PRNGKey(0)

    # Test 1: small lane-aligned shape (no ragged tail).
    k1, k2 = jax.random.split(key)
    B, C, H, W = 2, 2, 16, 16
    logits = jax.random.normal(k1, (B, C, H, W), dtype=jnp.float32)
    targets = jax.random.randint(k2, (B, H, W), 0, C, dtype=jnp.int32)
    loss = jax.block_until_ready(combined_loss(logits, targets, num_classes=C))
    ref = jax.block_until_ready(_reference_loss(logits, targets, num_classes=C))
    assert jnp.allclose(loss, ref, atol=1e-5, rtol=1e-5), (loss, ref)

    # Test 2: ragged spatial size + 3 classes (exercises masking path).
    k3, k4 = jax.random.split(k2)
    B2, C2, H2, W2 = 2, 3, 9, 13
    logits2 = jax.random.normal(k3, (B2, C2, H2, W2), dtype=jnp.float32)
    targets2 = jax.random.randint(k4, (B2, H2, W2), 0, C2, dtype=jnp.int32)
    loss2 = jax.block_until_ready(combined_loss(logits2, targets2, num_classes=C2))
    ref2 = jax.block_until_ready(_reference_loss(logits2, targets2, num_classes=C2))
    assert jnp.allclose(loss2, ref2, atol=1e-5, rtol=1e-5), (loss2, ref2)

    print("KERNEL_OK")
</pallas_src>

<mosaic_0001>
module attributes {stable_mosaic.version = 11 : i64} {
  func.func @_combined_loss_kernel(%arg0: i32, %arg1: i32, %arg2: memref<1x2x2x128xf32, #tpu.memory_space<vmem>>, %arg3: memref<1x2x128xi32, #tpu.memory_space<vmem>>, %arg4: memref<1x2x128xf32, #tpu.memory_space<vmem>>, %arg5: memref<1x2x128xf32, #tpu.memory_space<vmem>>, %arg6: memref<1x2x128xf32, #tpu.memory_space<vmem>>, %arg7: memref<1x2x128xf32, #tpu.memory_space<vmem>>) attributes {dimension_semantics = [#tpu.dimension_semantics<parallel>, #tpu.dimension_semantics<arbitrary>], iteration_bounds = array<i64: 2, 1>, scalar_prefetch = 0 : i64, scratch_operands = 0 : i64, tpu.core_type = #tpu.core_type<tc>, window_params = [{transform_indices = @transform_0, window_bounds = array<i64: 1, 2, 2, 128>}, {transform_indices = @transform_1, window_bounds = array<i64: 1, 2, 128>}, {transform_indices = @transform_2, window_bounds = array<i64: 1, 2, 128>}, {transform_indices = @transform_3, window_bounds = array<i64: 1, 2, 128>}, {transform_indices = @transform_4, window_bounds = array<i64: 1, 2, 128>}, {transform_indices = @transform_5, window_bounds = array<i64: 1, 2, 128>}]} {
    %c0_i32 = arith.constant 0 : i32
    %0 = arith.cmpi eq, %arg1, %c0_i32 : i32
    %1 = arith.extui %0 : i1 to i32
    %c0_i32_0 = arith.constant 0 : i32
    %2 = arith.cmpi ne, %1, %c0_i32_0 : i32
    scf.if %2 {
      %cst_37 = arith.constant 0.000000e+00 : f32
      %57 = vector.broadcast %cst_37 : f32 to vector<1x2x128xf32>
      %c0_38 = arith.constant 0 : index
      %c0_39 = arith.constant 0 : index
      %c0_40 = arith.constant 0 : index
      %58 = vector.load %arg4[%c0_38, %c0_39, %c0_40] : memref<1x2x128xf32, #tpu.memory_space<vmem>>, vector<1x2x128xf32>
      tpu.vector_store %arg4[%c0_38, %c0_39, %c0_40], %57 {strides = array<i32>} : memref<1x2x128xf32, #tpu.memory_space<vmem>>, vector<1x2x128xf32>,
      %cst_41 = arith.constant 0.000000e+00 : f32
      %59 = vector.broadcast %cst_41 : f32 to vector<1x2x128xf32>
      %c0_42 = arith.constant 0 : index
      %c0_43 = arith.constant 0 : index
      %c0_44 = arith.constant 0 : index
      %60 = vector.load %arg5[%c0_42, %c0_43, %c0_44] : memref<1x2x128xf32, #tpu.memory_space<vmem>>, vector<1x2x128xf32>
      tpu.vector_store %arg5[%c0_42, %c0_43, %c0_44], %59 {strides = array<i32>} : memref<1x2x128xf32, #tpu.memory_space<vmem>>, vector<1x2x128xf32>,
      %cst_45 = arith.constant 0.000000e+00 : f32
      %61 = vector.broadcast %cst_45 : f32 to vector<1x2x128xf32>
      %c0_46 = arith.constant 0 : index
      %c0_47 = arith.constant 0 : index
      %c0_48 = arith.constant 0 : index
      %62 = vector.load %arg6[%c0_46, %c0_47, %c0_48] : memref<1x2x128xf32, #tpu.memory_space<vmem>>, vector<1x2x128xf32>
      tpu.vector_store %arg6[%c0_46, %c0_47, %c0_48], %61 {strides = array<i32>} : memref<1x2x128xf32, #tpu.memory_space<vmem>>, vector<1x2x128xf32>,
      %cst_49 = arith.constant 0.000000e+00 : f32
      %63 = vector.broadcast %cst_49 : f32 to vector<1x2x128xf32>
      %c0_50 = arith.constant 0 : index
      %c0_51 = arith.constant 0 : index
      %c0_52 = arith.constant 0 : index
      %64 = vector.load %arg7[%c0_50, %c0_51, %c0_52] : memref<1x2x128xf32, #tpu.memory_space<vmem>>, vector<1x2x128xf32>
      tpu.vector_store %arg7[%c0_50, %c0_51, %c0_52], %63 {strides = array<i32>} : memref<1x2x128xf32, #tpu.memory_space<vmem>>, vector<1x2x128xf32>,
    } else {
    }
    %c0 = arith.constant 0 : index
    %c0_1 = arith.constant 0 : index
    %c0_2 = arith.constant 0 : index
    %c0_3 = arith.constant 0 : index
    %3 = vector.load %arg2[%c0, %c0_1, %c0_2, %c0_3] : memref<1x2x2x128xf32, #tpu.memory_space<vmem>>, vector<1x2x2x128xf32>
    %4 = vector.shape_cast %3 : vector<1x2x2x128xf32> to vector<2x2x128xf32>
    %c0_4 = arith.constant 0 : index
    %c0_5 = arith.constant 0 : index
    %c0_6 = arith.constant 0 : index
    %5 = vector.load %arg3[%c0_4, %c0_5, %c0_6] : memref<1x2x128xi32, #tpu.memory_space<vmem>>, vector<1x2x128xi32>
    %6 = vector.shape_cast %5 : vector<1x2x128xi32> to vector<2x128xi32>
    %cst = arith.constant dense<0xFF800000> : vector<2x128xf32>
    %7 = vector.multi_reduction <maximumf>, %4, %cst [0] : vector<2x2x128xf32> to vector<2x128xf32>
    %8 = vector.shape_cast %7 : vector<2x128xf32> to vector<1x2x128xf32>
    %9 = vector.broadcast %8 : vector<1x2x128xf32> to vector<2x2x128xf32>
    %10 = arith.subf %4, %9 : vector<2x2x128xf32>
    %11 = math.exp %10 : vector<2x2x128xf32>
    %cst_7 = arith.constant dense<0.000000e+00> : vector<2x128xf32>
    %12 = vector.multi_reduction <add>, %11, %cst_7 [0] : vector<2x2x128xf32> to vector<2x128xf32>
    %13 = vector.shape_cast %12 : vector<2x128xf32> to vector<1x2x128xf32>
    %cst_8 = arith.constant 1.000000e+00 : f32
    %14 = vector.broadcast %cst_8 : f32 to vector<1x2x128xf32>
    %15 = arith.divf %14, %13 : vector<1x2x128xf32>
    %16 = vector.broadcast %15 : vector<1x2x128xf32> to vector<2x2x128xf32>
    %17 = arith.mulf %11, %16 : vector<2x2x128xf32>
    %18 = math.log %13 : vector<1x2x128xf32>
    %19 = vector.broadcast %18 : vector<1x2x128xf32> to vector<2x2x128xf32>
    %20 = arith.subf %19, %10 : vector<2x2x128xf32>
    %21 = tpu.iota {dimensions = array<i32: 0>} : vector<2x2x128xi32>
    %22 = vector.shape_cast %6 : vector<2x128xi32> to vector<1x2x128xi32>
    %23 = vector.broadcast %22 : vector<1x2x128xi32> to vector<2x2x128xi32>
    %24 = arith.cmpi eq, %21, %23 : vector<2x2x128xi32>
    %25 = arith.extui %24 : vector<2x2x128xi1> to vector<2x2x128xi32>
    %26 = arith.sitofp %25 : vector<2x2x128xi32> to vector<2x2x128xf32>
    %c0_9 = arith.constant 0 : index
    %c0_10 = arith.constant 0 : index
    %c0_11 = arith.constant 0 : index
    %27 = vector.load %arg4[%c0_9, %c0_10, %c0_11] : memref<1x2x128xf32, #tpu.memory_space<vmem>>, vector<1x2x128xf32>
    %28 = vector.shape_cast %27 : vector<1x2x128xf32> to vector<2x128xf32>
    %29 = arith.mulf %17, %26 : vector<2x2x128xf32>
    %cst_12 = arith.constant dense<0.000000e+00> : vector<2x128xf32>
    %30 = vector.multi_reduction <add>, %29, %cst_12 [1] : vector<2x2x128xf32> to vector<2x128xf32>
    %31 = arith.addf %28, %30 : vector<2x128xf32>
    %c0_13 = arith.constant 0 : index
    %c0_14 = arith.constant 0 : index
    %c0_15 = arith.constant 0 : index
    %32 = vector.load %arg4[%c0_13, %c0_14, %c0_15] : memref<1x2x128xf32, #tpu.memory_space<vmem>>, vector<1x2x128xf32>
    %33 = vector.shape_cast %32 : vector<1x2x128xf32> to vector<2x128xf32>
    %34 = vector.shape_cast %31 : vector<2x128xf32> to vector<1x2x128xf32>
    tpu.vector_store %arg4[%c0_13, %c0_14, %c0_15], %34 {strides = array<i32>} : memref<1x2x128xf32, #tpu.memory_space<vmem>>, vector<1x2x128xf32>,
    %c0_16 = arith.constant 0 : index
    %c0_17 = arith.constant 0 : index
    %c0_18 = arith.constant 0 : index
    %35 = vector.load %arg5[%c0_16, %c0_17, %c0_18] : memref<1x2x128xf32, #tpu.memory_space<vmem>>, vector<1x2x128xf32>
    %36 = vector.shape_cast %35 : vector<1x2x128xf32> to vector<2x128xf32>
    %cst_19 = arith.constant dense<0.000000e+00> : vector<2x128xf32>
    %37 = vector.multi_reduction <add>, %17, %cst_19 [1] : vector<2x2x128xf32> to vector<2x128xf32>
    %38 = arith.addf %36, %37 : vector<2x128xf32>
    %c0_20 = arith.constant 0 : index
    %c0_21 = arith.constant 0 : index
    %c0_22 = arith.constant 0 : index
    %39 = vector.load %arg5[%c0_20, %c0_21, %c0_22] : memref<1x2x128xf32, #tpu.memory_space<vmem>>, vector<1x2x128xf32>
    %40 = vector.shape_cast %39 : vector<1x2x128xf32> to vector<2x128xf32>
    %41 = vector.shape_cast %38 : vector<2x128xf32> to vector<1x2x128xf32>
    tpu.vector_store %arg5[%c0_20, %c0_21, %c0_22], %41 {strides = array<i32>} : memref<1x2x128xf32, #tpu.memory_space<vmem>>, vector<1x2x128xf32>,
    %c0_23 = arith.constant 0 : index
    %c0_24 = arith.constant 0 : index
    %c0_25 = arith.constant 0 : index
    %42 = vector.load %arg6[%c0_23, %c0_24, %c0_25] : memref<1x2x128xf32, #tpu.memory_space<vmem>>, vector<1x2x128xf32>
    %43 = vector.shape_cast %42 : vector<1x2x128xf32> to vector<2x128xf32>
    %cst_26 = arith.constant dense<0.000000e+00> : vector<2x128xf32>
    %44 = vector.multi_reduction <add>, %26, %cst_26 [1] : vector<2x2x128xf32> to vector<2x128xf32>
    %45 = arith.addf %43, %44 : vector<2x128xf32>
    %c0_27 = arith.constant 0 : index
    %c0_28 = arith.constant 0 : index
    %c0_29 = arith.constant 0 : index
    %46 = vector.load %arg6[%c0_27, %c0_28, %c0_29] : memref<1x2x128xf32, #tpu.memory_space<vmem>>, vector<1x2x128xf32>
    %47 = vector.shape_cast %46 : vector<1x2x128xf32> to vector<2x128xf32>
    %48 = vector.shape_cast %45 : vector<2x128xf32> to vector<1x2x128xf32>
    tpu.vector_store %arg6[%c0_27, %c0_28, %c0_29], %48 {strides = array<i32>} : memref<1x2x128xf32, #tpu.memory_space<vmem>>, vector<1x2x128xf32>,
    %c0_30 = arith.constant 0 : index
    %c0_31 = arith.constant 0 : index
    %c0_32 = arith.constant 0 : index
    %49 = vector.load %arg7[%c0_30, %c0_31, %c0_32] : memref<1x2x128xf32, #tpu.memory_space<vmem>>, vector<1x2x128xf32>
    %50 = vector.shape_cast %49 : vector<1x2x128xf32> to vector<2x128xf32>
    %51 = arith.mulf %26, %20 : vector<2x2x128xf32>
    %cst_33 = arith.constant dense<0.000000e+00> : vector<2x128xf32>
    %52 = vector.multi_reduction <add>, %51, %cst_33 [1] : vector<2x2x128xf32> to vector<2x128xf32>
    %53 = arith.addf %50, %52 : vector<2x128xf32>
    %c0_34 = arith.constant 0 : index
    %c0_35 = arith.constant 0 : index
    %c0_36 = arith.constant 0 : index
    %54 = vector.load %arg7[%c0_34, %c0_35, %c0_36] : memref<1x2x128xf32, #tpu.memory_space<vmem>>, vector<1x2x128xf32>
    %55 = vector.shape_cast %54 : vector<1x2x128xf32> to vector<2x128xf32>
    %56 = vector.shape_cast %53 : vector<2x128xf32> to vector<1x2x128xf32>
    tpu.vector_store %arg7[%c0_34, %c0_35, %c0_36], %56 {strides = array<i32>} : memref<1x2x128xf32, #tpu.memory_space<vmem>>, vector<1x2x128xf32>,
    return
  }
  func.func @transform_0(%arg0: i32, %arg1: i32) -> (i32, i32, i32, i32) {
    %c0_i32 = arith.constant 0 : i32
    %c0_i32_0 = arith.constant 0 : i32
    %c0_i32_1 = arith.constant 0 : i32
    return %arg0, %c0_i32, %arg1, %c0_i32_0 : i32, i32, i32, i32
  }
  func.func @transform_1(%arg0: i32, %arg1: i32) -> (i32, i32, i32) {
    %c0_i32 = arith.constant 0 : i32
    %c0_i32_0 = arith.constant 0 : i32
    return %arg0, %arg1, %c0_i32 : i32, i32, i32
  }
  func.func @transform_2(%arg0: i32, %arg1: i32) -> (i32, i32, i32) {
    %c0_i32 = arith.constant 0 : i32
    %c0_i32_0 = arith.constant 0 : i32
    %c0_i32_1 = arith.constant 0 : i32
    return %arg0, %c0_i32, %c0_i32_0 : i32, i32, i32
  }
  func.func @transform_3(%arg0: i32, %arg1: i32) -> (i32, i32, i32) {
    %c0_i32 = arith.constant 0 : i32
    %c0_i32_0 = arith.constant 0 : i32
    %c0_i32_1 = arith.constant 0 : i32
    return %arg0, %c0_i32, %c0_i32_0 : i32, i32, i32
  }
  func.func @transform_4(%arg0: i32, %arg1: i32) -> (i32, i32, i32) {
    %c0_i32 = arith.constant 0 : i32
    %c0_i32_0 = arith.constant 0 : i32
    %c0_i32_1 = arith.constant 0 : i32
    return %arg0, %c0_i32, %c0_i32_0 : i32, i32, i32
  }
  func.func @transform_5(%arg0: i32, %arg1: i32) -> (i32, i32, i32) {
    %c0_i32 = arith.constant 0 : i32
    %c0_i32_0 = arith.constant 0 : i32
    %c0_i32_1 = arith.constant 0 : i32
    return %arg0, %c0_i32, %c0_i32_0 : i32, i32, i32
  }
}

</mosaic_0001>

<bundles_post_ra>
// kernel: tpu_custom_call.1
= control target key start
LH: loop header
LB: loop body
LE: loop exit
PB: predicated region body
PF: predicated region fallthrough
CT: control target
= control target key end

     0   :  { %s1420_s0 = inlined_call_operand.hbm [shape: f32[2,2,2,128], index: 0, kind: input, shape index: {}]   ;;  %s1421_s1 = inlined_call_operand.hbm [shape: s32[2,2,128], index: 1, kind: input, shape index: {}]   ;;  %s1422_s2 = inlined_call_operand.hbm [shape: f32[2,2,128], index: 2, kind: output, shape index: {0}]   ;;  %s1423_s3 = inlined_call_operand.hbm [shape: f32[2,2,128], index: 3, kind: output, shape index: {1}]   ;;  %s1424_s4 = inlined_call_operand.hbm [shape: f32[2,2,128], index: 4, kind: output, shape index: {2}]   ;;  %s1425_s5 = inlined_call_operand.hbm [shape: f32[2,2,128], index: 5, kind: output, shape index: {3}]  }
   0x1   :  { %1429 = sst [smem:[#allocation21_spill]] %s1420_s0 }
   0x2   :  { %11 = vsyncpa [#allocation3], 0 }
   0x3   :  { %13 = vsyncpa [#allocation3 + $0x1], 0 }
   0x4   :  { %14 = vsyncpa [#allocation6], 0 }
   0x5   :  { %16 = vsyncpa [#allocation6 + $0x1], 0 }
   0x6   :  { %17 = vsyncpa [#allocation4], 0 }
   0x7   :  { %19 = vsyncpa [#allocation4 + $0x1], 0 }
   0x8   :  { %20 = vsyncpa [#allocation9], 0 }
   0x9   :  { %22 = vsyncpa [#allocation9 + $0x1], 0 }
   0xa   :  { %23 = vsyncpa [#allocation12], 0 }
   0xb   :  { %25 = vsyncpa [#allocation12 + $0x1], 0  ;;  %s1107_s18 = smov 0   ;;  %s1109_s19 = smov 0  }
   0xc   :  { %s1111_s20 = smov 0   ;;  %s1113_s21 = smov 0  }
   0xd   :  { %s1115_s22 = smov 0   ;;  %s1117_s23 = smov 0  }
   0xe LB: > { %1430 = sst [smem:[#allocation18_spill]] %s1054_s20  ;;  %s1138_s24 = sadd.s32 4294967295, %s1066_s23   ;;  %s1066_s23 = sphi %s1117_s23, %s31_s23   ;;  %s1062_s22 = sphi %s1115_s22, %s1448_s22   ;;  %s1058_s21 = sphi %s1113_s21, %s1447_s21   ;;  %s1054_s20 = sphi %s1111_s20, %s1443_s20   ;;  %s1050_s19 = sphi %s1109_s19, %s1446_s19   ;;  %s1046_s18 = sphi %s1107_s18, %s1445_s18  }
   0xf   : > { %s1426_s25 = sadd.s32 4294967294, %s1066_s23   ;;  %s43_s26 = sadd.s32 1, %s1062_s22 }
  0x10   : > { %s52_s27 = sadd.s32 1, %s1054_s20  ;;  %p45_p0 = scmp.ge.s32.totalorder %s43_s26, 2 }
  0x11   : > { %p59_p1 = scmp.ne.s32.totalorder %s1054_s20, %s1050_s19  ;;  %p60_p2 = scmp.eq.s32.totalorder %s1066_s23, 0 }
  0x12   : > { %p65_p3 = scmp.ne.s32.totalorder %s1050_s19, %s1046_s18  ;;  %s1450_s26 = smov (%p45_p0, %s43_s26), 0 }
  0x13   : > { %1431 = sst [smem:[#allocation19_spill]] %s1450_s26  ;;  %p1150_p4 = por %p60_p2, %p59_p1 }
  0x14   : > { %p66_p5 = scmp.eq.s32.totalorder %s1138_s24, 0  ;;  %s47_s29 = ssub.s32 %s1062_s22, %s1450_s26 }
  0x15   : > { %p117_p6 = scmp.eq.s32.totalorder %s1138_s24, 1  ;;  %p50_p7 = scmp.eq.s32.totalorder %s47_s29, 0 }
  0x16   : > { %p1158_p8 = por %p66_p5, %p65_p3  ;;  %p123_p10 = scmp.eq.s32.totalorder %s1426_s25, 1 }
  0x17   : > { %p1162_p9 = por %p117_p6, %p59_p1  ;;  %p721_p12 = scmp.ge.s32.totalorder %s1066_s23, 2 }
  0x18   : > { %s1169_s7 = scalar_select %p50_p7, %s1054_s20, %s52_s27  }
  0x19   : > { %p1171_p11 = por %p123_p10, %p65_p3  ;;  %p779_p13 = scmp.lt.s32.totalorder %s1066_s23, 2 }
  0x1a   : > { %1435 = sst [smem:[#allocation20_spill]] %s1169_s7  ;;  %s1178_s9 = sand.u32 1, %s1054_s20  }
  0x1b   : > { %s722_s10 = sshll.u32 %s1178_s9, 2  ;;  %s746_s11 = sshll.u32 %s1062_s22, 6 }
  0x1c   : > { %s1437_s0 = sld [smem:[#allocation21_spill]]  ;;  %s225_s15 = scalar_lea.vmem [#allocation2], %s722_s10 }
  0x1d   : > { %s233_s16 = sshll.u32 %s225_s15, 4  ;;  %p1187_p0 = pnand %p779_p13, %p1150_p4  ;;  %s234_s16 = int_to_ptr.vmem [resolvable:$true] %s233_s16 }
  0x1e   : > { %p727_p1 = scmp.ge.s32.totalorder %s1066_s23, 1  ;;  %s222_s27 = scalar_lea.sflag [#allocation3], %s1178_s9 }
  0x1f   : > { %p842_p2 = pneg %p1187_p0  ;;  %s853_s29 = scalar_lea.vmem %s234_s16, 64 }
  0x20   : > { %p854_p3 = scmp.ne.s32.totalorder %s234_s16, %s853_s29  ;;  %s1068_s10 = smov [#allocation2]  }
  0x22   : > { %s232_s14 = scalar_lea.hbm %s1437_s0, %s746_s11  ;;  %p856_p5 = pnand %p854_p3, %p842_p2 }
  0x23   : > { %s858_s11 = sshll.u32 %s1068_s10, 4  ;;  %s859_s11 = int_to_ptr.vmem [resolvable:$false] %s858_s11 }
  0x24   : > { %p857_p6 = pneg %p856_p5  ;;  %s860_s28 = scalar_lea.vmem %s859_s11, 128 }
  0x25   : > { %p861_p4 = scmp.lt.s32.totalorder %s234_s16, %s859_s11  ;;  %p862_p7 = scmp.lt.s32.totalorder %s860_s28, %s853_s29 }
  0x27   : > { %p863_p10 = por %p862_p7, %p861_p4 }
  0x29   : > { %p864_p13 = pnand %p863_p10, %p857_p6 }
  0x2b   : > { %867 = shalt.err (!%p864_p13)
}
  0x2c   : > { %s1069_s12 = smov 32   ;;  %s1070_s13 = smov 2  }
  0x2d   : > { %762 = dma.hbm_to_vmem [thread:$0]  (!%p1187_p0), %s232_s14, 64, %s234_s16, %s222_s27, %s1069_s12, %s1069_s12, %s1070_s13  }
  0x2e   : > { %p260_p3 = scmp.lt.s32.totalorder %s1066_s23, 3  ;;  %s725_s15 = sshll.u32 %s1178_s9, 1 }
  0x2f   : > { %s726_s10 = sshll.u32 %s1062_s22, 5  ;;  %s247_s0 = scalar_lea.vmem [#allocation5], %s725_s15 }
  0x30   : > { %p1205_p5 = pnand %p727_p1, %p260_p3  ;;  %s253_s25 = scalar_lea.hbm %s1421_s1, %s726_s10 }
  0x31   : > { %s255_s26 = sshll.u32 %s247_s0, 4  ;;  %s244_s7 = scalar_lea.sflag [#allocation6], %s1178_s9  ;;  %s256_s26 = int_to_ptr.vmem [resolvable:$true] %s255_s26 }
  0x32   : > { %s881_s20 = scalar_lea.vmem %s256_s26, 32  ;;  %s1071_s14 = smov [#allocation5]  }
  0x33   : > { %p882_p6 = scmp.ne.s32.totalorder %s256_s26, %s881_s20  ;;  %s886_s16 = sshll.u32 %s1071_s14, 4  ;;  %s887_s16 = int_to_ptr.vmem [resolvable:$false] %s886_s16 }
  0x34   : > { %s888_s27 = scalar_lea.vmem %s887_s16, 64  ;;  %p889_p1 = scmp.lt.s32.totalorder %s256_s26, %s887_s16 }
  0x35   : > { %p884_p4 = pnand %p882_p6, %p842_p2  ;;  %p890_p10 = scmp.lt.s32.totalorder %s888_s27, %s881_s20 }
  0x37   : > { %p885_p7 = pneg %p884_p4  ;;  %p891_p13 = por %p890_p10, %p889_p1 }
  0x39   : > { %p892_p3 = pnand %p891_p13, %p885_p7 }
  0x3b   : > { %895 = shalt.err (!%p892_p3)
}
  0x3c   : > { %765 = dma.hbm_to_vmem [thread:$0]  (!%p1187_p0), %s253_s25, 32, %s256_s26, %s244_s7  }
  0x3d   : > { %264 = sbr.rel (%p1205_p5) target bundleno = 209 (0xd1), region = 28  ;;  %s1221_s0 = sand.u32 (!%p1205_p5), 1, %s1050_s19  }
  0x3e   : > { %s728_s9 = sshll.u32 (!%p1205_p5), %s1221_s0, 2  ;;  %s267_s12 = scalar_lea.sflag (!%p1205_p5), [#allocation3], %s1221_s0 }
  0x3f   : > { %s270_s13 = scalar_lea.vmem (!%p1205_p5), [#allocation2], %s728_s9 }
  0x42   : > { %1025 = dma.done.wait (%p1158_p8), %s267_s12, 64  }
  0x43   : > { %1027 = vsyncadd (%p1158_p8), %s267_s12, 4294967232  ;;  %s729_s20 = sshll.u32 %s1221_s0, 1  ;;  %s276_s25 = scalar_lea.sflag [#allocation6], %s1221_s0 }
  0x44   : > { %s279_s26 = scalar_lea.vmem [#allocation5], %s729_s20 }
  0x45   : > { %1029 = dma.done.wait (%p1158_p8), %s276_s25, 32  }
  0x46   : > { %1031 = vsyncadd (%p1158_p8), %s276_s25, 4294967264  ;;  %s1235_s7 = scalar_lea.vmem [#allocation8], %s729_s20  ;;  %v1072_v0 = vmov 0.0   ;;  %s1238_s17 = scalar_lea.vmem [#allocation7], %s729_s20  ;;  %vm337_vm0 = vcmask 1041408   ;;  %vm383_vm3 = vcmask 1041409  }
  0x47   : > { %331 = vst [vmem:[%s1235_s7] sm:$0x3] %v1072_v0  ;;  %330 = vst [vmem:[%s1238_s17] sm:$0x3] %v1072_v0  ;;  %s1241_s15 = scalar_lea.vmem [#allocation10], %s729_s20  ;;  %s1244_s10 = scalar_lea.vmem [#allocation11], %s729_s20  ;;  %v336_v1 = vld [vmem:[%s279_s26] sm:$0x3] }
  0x48   : > { %332 = vst [vmem:[%s1241_s15] sm:$0x3] %v1072_v0  ;;  %333 = vst [vmem:[%s1244_s10] sm:$0x3] %v1072_v0  ;;  %v334_v2 = vld [vmem:[%s270_s13] sm:$0x3]  ;;  %v335_v3 = vld [vmem:[%s270_s13 + $0x2] sm:$0x3] }
  0x49   : > { %vm358_vm1 = vcmp.eq.s32.totalorder %v336_v1, 0  ;;  %vm359_vm2 = vcmp.eq.s32.totalorder %v336_v1, 1  ;;  %v338_v4 = vsel %vm337_vm0, %v334_v2, -inf  ;;  %v339_v5 = vsel %vm337_vm0, %v335_v3, -inf  ;;  %s508_s30 = sshll.u32 %s1241_s15, 4  ;;  %s458_s29 = sand.u32 1, %s1138_s24   ;;  %s1269_s30 = int_to_ptr.vmem [resolvable:$true] %s508_s30 }
  0x4a   : > { %v734_v6 = vsel %vm358_vm1, 1.0, %v1072_v0  ;;  %v735_v7 = vsel %vm359_vm2, 1.0, %v1072_v0  ;;  %v340_v8 = vmax.f32 %v338_v4, %v339_v5  ;;  %s1265_s11 = sshll.u32 %s1058_s21, 5  ;;  %s495_s28 = sshll.u32 %s1235_s7, 4  ;;  %s1280_s28 = int_to_ptr.vmem [resolvable:$true] %s495_s28 }
  0x4b   : > { %v410_v9 = vsel %vm337_vm0, %v734_v6, 0.0  ;;  %v417_v10 = vsel %vm337_vm0, %v735_v7, 0.0  ;;  %s1277_s16 = scalar_lea.hbm %s1423_s3, %s1265_s11  ;;  %s482_s27 = sshll.u32 %s1238_s17, 4  ;;  %s1296_s27 = int_to_ptr.vmem [resolvable:$true] %s482_s27 }
  0x4c   : > { %v341_v11 = vsub.f32 %v334_v2, %v340_v8  ;;  %v342_v12 = vsub.f32 %v335_v3, %v340_v8  ;;  %v411_v13 = vrot.slane %v410_v9, 4  ;;  %v418_v14 = vrot.slane %v417_v10, 4  ;;  %s1287_s13 = scalar_lea.hbm %s1422_s2, %s1265_s11  ;;  %s1293_s26 = scalar_lea.hbm %s1424_s4, %s1265_s11 }
  0x4d   : > { %s1301_s21 = scalar_lea.sflag [#allocation9], %s458_s29  ;;  %s896_s14 = scalar_lea.vmem %s1280_s28, 32 }
  0x4e   : > { %v343_v15 = vmul.f32 1.442695, %v341_v11  ;;  %v345_v16 = vmul.f32 1.442695, %v342_v12  ;;  %v412_v17 = vadd.f32 %v411_v13, %v410_v9  ;;  %v419_v18 = vadd.f32 %v418_v14, %v417_v10  ;;  %v388_v10 = vld [vmem:[%s1235_s7] sm:$0x3]  ;;  %p897_p8 = scmp.ne.s32.totalorder %s1280_s28, %s896_s14 }
  0x4f   : > { %v409_v25 = vld [vmem:[%s1241_s15] sm:$0x3]  ;;  %s1073_s9 = smov [#allocation8]  }
  0x50   : > { %832 = vpow2.f32 %v343_v15  ;;  %v413_v19 = vrot.slane %v412_v17, 2  ;;  %v420_v20 = vrot.slane %v419_v18, 2  ;;  %p898_p0 = pnand %p897_p8, %p1162_p9  ;;  %s900_s12 = sshll.u32 %s1073_s9, 4  ;;  %s901_s12 = int_to_ptr.vmem [resolvable:$false] %s900_s12 }
  0x51   : > { %834 = vpow2.f32 %v345_v16  ;;  %s902_s20 = scalar_lea.vmem %s901_s12, 64  ;;  %p903_p5 = scmp.lt.s32.totalorder %s1280_s28, %s901_s12 }
  0x52   : > { %v414_v21 = vadd.f32 %v413_v19, %v412_v17  ;;  %v421_v22 = vadd.f32 %v420_v20, %v419_v18  ;;  %v364_v18 = vld [vmem:[%s1238_s17] sm:$0x3]  ;;  %p899_p2 = pneg %p898_p0  ;;  %p904_p6 = scmp.lt.s32.totalorder %s902_s20, %s896_s14 }
  0x54   : > { %v415_v23 = vrot.slane %v414_v21, 1  ;;  %v422_v24 = vrot.slane %v421_v22, 1  ;;  %p905_p4 = por %p904_p6, %p903_p5 }
  0x56   : > { %v416_v26 = vadd.f32 %v415_v23, %v414_v21  ;;  %v423_v27 = vadd.f32 %v422_v24, %v421_v22  ;;  %p906_p7 = pnand %p905_p4, %p899_p2 }
  0x58   : > { %v426_v28 = vsel %vm383_vm3, %v423_v27, %v416_v26 }
  0x59   : > { %v428_v29 = vadd.f32 %v426_v28, %v409_v25 }
  0x5b   : > { %429 = vst [vmem:[%s1241_s15] sm:$0x3] %v428_v29 }
  0x5d   : > { %v833_v30 = vpop.eup %832 }
  0x5e   : > { %v835_v31 = vpop.eup %834  ;;  %v347_v32 = vsel %vm337_vm0, %v833_v30, 0.0 }
  0x5f   : > { %v348_v33 = vsel %vm337_vm0, %v835_v31, 0.0 }
  0x60   : > { %v349_v34 = vadd.f32 %v348_v33, %v347_v32 }
  0x62   : > { %836 = vrcp.f32 %v349_v34 }
  0x63   : > { %838 = vlog2.f32 %v349_v34 }
  0x6f   : > { %v837_v35 = vpop.eup %836 }
  0x70   : > { %v839_v36 = vpop.eup %838  ;;  %v352_v37 = vmul.f32 %v837_v35, %v833_v30  ;;  %v353_v38 = vmul.f32 %v837_v35, %v835_v31 }
  0x71   : > { %v355_v39 = vmul.f32 0.6931472, %v839_v36 }
  0x72   : > { %v389_v40 = vsel %vm337_vm0, %v352_v37, 0.0  ;;  %v396_v41 = vsel %vm337_vm0, %v353_v38, 0.0  ;;  %v365_v42 = vmul.f32 %v734_v6, %v352_v37  ;;  %v366_v43 = vmul.f32 %v735_v7, %v353_v38 }
  0x73   : > { %v390_v44 = vrot.slane %v389_v40, 4  ;;  %v397_v45 = vrot.slane %v396_v41, 4  ;;  %v356_v46 = vsub.f32 %v355_v39, %v341_v11  ;;  %v357_v47 = vsub.f32 %v355_v39, %v342_v12 }
  0x74   : > { %v367_v48 = vsel %vm337_vm0, %v365_v42, 0.0  ;;  %v374_v49 = vsel %vm337_vm0, %v366_v43, 0.0 }
  0x75   : > { %v391_v50 = vadd.f32 %v390_v44, %v389_v40  ;;  %v398_v51 = vadd.f32 %v397_v45, %v396_v41  ;;  %v368_v52 = vrot.slane %v367_v48, 4  ;;  %v375_v53 = vrot.slane %v374_v49, 4 }
  0x76   : > { %v431_v54 = vmul.f32 %v734_v6, %v356_v46  ;;  %v432_v55 = vmul.f32 %v735_v7, %v357_v47 }
  0x77   : > { %v392_v56 = vrot.slane %v391_v50, 2  ;;  %v399_v57 = vrot.slane %v398_v51, 2  ;;  %v369_v58 = vadd.f32 %v368_v52, %v367_v48  ;;  %v376_v59 = vadd.f32 %v375_v53, %v374_v49 }
  0x78   : > { %v433_v60 = vsel %vm337_vm0, %v431_v54, 0.0  ;;  %v440_v61 = vsel %vm337_vm0, %v432_v55, 0.0 }
  0x79   : > { %v393_v62 = vadd.f32 %v392_v56, %v391_v50  ;;  %v400_v63 = vadd.f32 %v399_v57, %v398_v51  ;;  %v370_v0 = vrot.slane %v369_v58, 2  ;;  %v377_v1 = vrot.slane %v376_v59, 2 }
  0x7a   : > { %v434_v2 = vrot.slane %v433_v60, 4  ;;  %v441_v3 = vrot.slane %v440_v61, 4 }
  0x7b   : > { %v394_v4 = vrot.slane %v393_v62, 1  ;;  %v401_v5 = vrot.slane %v400_v63, 1  ;;  %v371_v6 = vadd.f32 %v370_v0, %v369_v58  ;;  %v378_v7 = vadd.f32 %v377_v1, %v376_v59 }
  0x7c   : > { %v435_v8 = vadd.f32 %v434_v2, %v433_v60  ;;  %v442_v9 = vadd.f32 %v441_v3, %v440_v61 }
  0x7d   : > { %v395_v11 = vadd.f32 %v394_v4, %v393_v62  ;;  %v402_v12 = vadd.f32 %v401_v5, %v400_v63  ;;  %v372_v13 = vrot.slane %v371_v6, 1  ;;  %v379_v14 = vrot.slane %v378_v7, 1 }
  0x7e   : > { %v436_v15 = vrot.slane %v435_v8, 2  ;;  %v443_v16 = vrot.slane %v442_v9, 2 }
  0x7f   : > { %v405_v17 = vsel %vm383_vm3, %v402_v12, %v395_v11  ;;  %v373_v19 = vadd.f32 %v372_v13, %v371_v6  ;;  %v380_v20 = vadd.f32 %v379_v14, %v378_v7 }
  0x80   : > { %v407_v21 = vadd.f32 %v405_v17, %v388_v10  ;;  %v437_v22 = vadd.f32 %v436_v15, %v435_v8  ;;  %v444_v23 = vadd.f32 %v443_v16, %v442_v9 }
  0x81   : > { %v384_v24 = vsel %vm383_vm3, %v380_v20, %v373_v19 }
  0x82   : > { %408 = vst [vmem:[%s1235_s7] sm:$0x3] %v407_v21  ;;  %v386_v25 = vadd.f32 %v384_v24, %v364_v18  ;;  %v438_v26 = vrot.slane %v437_v22, 1  ;;  %v445_v27 = vrot.slane %v444_v23, 1 }
  0x83   : > { %909 = shalt.err (!%p906_p7)
}
  0x84   : > { %s910_s24 = scalar_lea.hbm %s1277_s16, 32  ;;  %s914_s25 = scalar_lea.hbm %s1423_s3, 64 }
  0x85   : > { %p911_p1 = scmp.ne.s32.totalorder %s1277_s16, %s910_s24  ;;  %p915_p3 = scmp.lt.s32.totalorder %s1277_s16, %s1423_s3 }
  0x86   : > { %p916_p8 = scmp.lt.s32.totalorder %s914_s25, %s910_s24 }
  0x87   : > { %p912_p10 = pnand %p911_p1, %p1162_p9 }
  0x88   : > { %p917_p0 = por %p916_p8, %p915_p3 }
  0x89   : > { %p913_p13 = pneg %p912_p10 }
  0x8b   : > { %p918_p2 = pnand %p917_p0, %p913_p13 }
  0x8d   : > { %921 = shalt.err (!%p918_p2)
}
  0x8e   : > { %752 = dma.vmem_to_hbm [thread:$0]  (%p1162_p9), %s1280_s28, 32, %s1277_s16, %s1301_s21   ;;  %387 = vst [vmem:[%s1238_s17] sm:$0x3] %v386_v25  ;;  %v430_v28 = vld [vmem:[%s1244_s10] sm:$0x3]  ;;  %v439_v29 = vadd.f32 %v438_v26, %v437_v22  ;;  %v446_v30 = vadd.f32 %v445_v27, %v444_v23 }
  0x8f   : > { %s922_s15 = scalar_lea.vmem %s1269_s30, 32  ;;  %s1074_s14 = smov [#allocation10]  }
  0x90   : > { %p923_p5 = scmp.ne.s32.totalorder %s1269_s30, %s922_s15  ;;  %s926_s12 = sshll.u32 %s1074_s14, 4  ;;  %s927_s12 = int_to_ptr.vmem [resolvable:$false] %s926_s12 }
  0x91   : > { %s928_s20 = scalar_lea.vmem %s927_s12, 64  ;;  %p929_p7 = scmp.lt.s32.totalorder %s1269_s30, %s927_s12 }
  0x92   : > { %p924_p6 = pnand %p923_p5, %p1162_p9  ;;  %p930_p1 = scmp.lt.s32.totalorder %s928_s20, %s922_s15 }
  0x94   : > { %p925_p4 = pneg %p924_p6  ;;  %p931_p10 = por %p930_p1, %p929_p7 }
  0x96   : > { %p932_p13 = pnand %p931_p10, %p925_p4 }
  0x98   : > { %935 = shalt.err (!%p932_p13)
}
  0x99   : > { %s936_s17 = scalar_lea.hbm %s1293_s26, 32  ;;  %s940_s24 = scalar_lea.hbm %s1424_s4, 64 }
  0x9a   : > { %p937_p3 = scmp.ne.s32.totalorder %s1293_s26, %s936_s17  ;;  %p941_p2 = scmp.lt.s32.totalorder %s1293_s26, %s1424_s4 }
  0x9b   : > { %p942_p5 = scmp.lt.s32.totalorder %s940_s24, %s936_s17 }
  0x9c   : > { %p938_p8 = pnand %p937_p3, %p1162_p9 }
  0x9d   : > { %p943_p6 = por %p942_p5, %p941_p2 }
  0x9e   : > { %p939_p0 = pneg %p938_p8 }
  0xa0   : > { %p944_p4 = pnand %p943_p6, %p939_p0 }
  0xa2   : > { %947 = shalt.err (!%p944_p4)
}
  0xa3   : > { %753 = dma.vmem_to_hbm [thread:$0]  (%p1162_p9), %s1269_s30, 32, %s1293_s26, %s1301_s21  }
  0xa4   : > { %s454_s25 = scalar_lea.sflag [#allocation4], %s1221_s0  ;;  %s948_s9 = scalar_lea.vmem %s1296_s27, 32 }
  0xa5   : > { %p949_p7 = scmp.ne.s32.totalorder %s1296_s27, %s948_s9  ;;  %s1075_s15 = smov [#allocation7]  }
  0xa6   : > { %s952_s14 = sshll.u32 %s1075_s15, 4  ;;  %s953_s14 = int_to_ptr.vmem [resolvable:$false] %s952_s14 }
  0xa7   : > { %p950_p1 = pnand %p949_p7, %p1162_p9  ;;  %s954_s12 = scalar_lea.vmem %s953_s14, 64 }
  0xa8   : > { %p955_p13 = scmp.lt.s32.totalorder %s1296_s27, %s953_s14  ;;  %p956_p3 = scmp.lt.s32.totalorder %s954_s12, %s948_s9 }
  0xa9   : > { %p951_p10 = pneg %p950_p1 }
  0xaa   : > { %p957_p8 = por %p956_p3, %p955_p13 }
  0xac   : > { %p958_p0 = pnand %p957_p8, %p951_p10 }
  0xae   : > { %961 = shalt.err (!%p958_p0)
}
  0xaf   : > { %s962_s30 = scalar_lea.hbm %s1287_s13, 32  ;;  %s966_s20 = scalar_lea.hbm %s1422_s2, 64 }
  0xb0   : > { %p963_p2 = scmp.ne.s32.totalorder %s1287_s13, %s962_s30  ;;  %p967_p4 = scmp.lt.s32.totalorder %s1287_s13, %s1422_s2 }
  0xb1   : > { %p968_p7 = scmp.lt.s32.totalorder %s966_s20, %s962_s30 }
  0xb2   : > { %p964_p5 = pnand %p963_p2, %p1162_p9 }
  0xb3   : > { %p969_p1 = por %p968_p7, %p967_p4 }
  0xb4   : > { %p965_p6 = pneg %p964_p5 }
  0xb6   : > { %p970_p10 = pnand %p969_p1, %p965_p6 }
  0xb8   : > { %973 = shalt.err (!%p970_p10)
}
  0xb9   : > { %751 = dma.vmem_to_hbm [thread:$0]  (%p1162_p9), %s1296_s27, 32, %s1287_s13, %s454_s25   ;;  %v449_v31 = vsel %vm383_vm3, %v446_v30, %v439_v29 }
  0xba   : > { %s1373_s7 = scalar_lea.hbm %s1425_s5, %s1265_s11  ;;  %v451_v32 = vadd.f32 %v449_v31, %v430_v28  ;;  %s1440_s29 = sshll.u32 %s1244_s10, 4  ;;  %s522_s29 = int_to_ptr.vmem [resolvable:$true] %s1440_s29 }
  0xbb   : > { %s469_s9 = scalar_lea.sflag [#allocation12], %s1221_s0  ;;  %s974_s15 = scalar_lea.vmem %s522_s29, 32 }
  0xbc   : > { %452 = vst [vmem:[%s1244_s10] sm:$0x3] %v451_v32  ;;  %p975_p13 = scmp.ne.s32.totalorder %s522_s29, %s974_s15  ;;  %s1076_s14 = smov [#allocation11]  }
  0xbd   : > { %s978_s12 = sshll.u32 %s1076_s14, 4  ;;  %s979_s12 = int_to_ptr.vmem [resolvable:$false] %s978_s12 }
  0xbe   : > { %p976_p3 = pnand %p975_p13, %p1162_p9  ;;  %s980_s27 = scalar_lea.vmem %s979_s12, 64 }
  0xbf   : > { %p981_p0 = scmp.lt.s32.totalorder %s522_s29, %s979_s12  ;;  %p982_p2 = scmp.lt.s32.totalorder %s980_s27, %s974_s15 }
  0xc0   : > { %p977_p8 = pneg %p976_p3 }
  0xc1   : > { %p983_p5 = por %p982_p2, %p981_p0 }
  0xc3   : > { %p984_p6 = pnand %p983_p5, %p977_p8 }
  0xc5   : > { %987 = shalt.err (!%p984_p6)
}
  0xc6   : > { %s988_s10 = scalar_lea.hbm %s1373_s7, 32  ;;  %s992_s13 = scalar_lea.hbm %s1425_s5, 64 }
  0xc7   : > { %p989_p4 = scmp.ne.s32.totalorder %s1373_s7, %s988_s10  ;;  %p993_p10 = scmp.lt.s32.totalorder %s1373_s7, %s1425_s5 }
  0xc8   : > { %p994_p13 = scmp.lt.s32.totalorder %s992_s13, %s988_s10 }
  0xc9   : > { %p990_p7 = pnand %p989_p4, %p1162_p9 }
  0xca   : > { %p995_p3 = por %p994_p13, %p993_p10 }
  0xcb   : > { %p991_p1 = pneg %p990_p7 }
  0xcd   : > { %p996_p8 = pnand %p995_p3, %p991_p1 }
  0xcf   : > { %999 = shalt.err (!%p996_p8)
}
  0xd0   : > { %754 = dma.vmem_to_hbm [thread:$0]  (%p1162_p9), %s522_s29, 32, %s1373_s7, %s469_s9  }
  0xd1 PF: > { %s533_s26 = sand.u32 1, %s1046_s18   ;;  %p767_p0 = pnand %p721_p12, %p1171_p11 }
  0xd2   : > { %s534_s21 = scalar_lea.sflag [#allocation4], %s533_s26 }
  0xd3   : > { %p768_p2 = pneg %p767_p0 }
  0xd5   : > { %1033 = dma.done.wait (%p768_p2), %s534_s21, 32  }
  0xd6   : > { %1035 = vsyncadd (%p768_p2), %s534_s21, 4294967264  ;;  %s1441_s20 = sadd.s32 4294967294, %s1066_s23  }
  0xd7   : > { %s542_s17 = sand.u32 1, %s1441_s20  }
  0xd8   : > { %s543_s28 = scalar_lea.sflag [#allocation9], %s542_s17 }
  0xd9   : > { %1037 = dma.done.wait (%p768_p2), %s543_s28, 64  }
  0xda   : > { %1039 = vsyncadd (%p768_p2), %s543_s28, 4294967232  ;;  %s561_s6 = scalar_lea.sflag [#allocation12], %s533_s26 }
  0xdb   : > { %1041 = dma.done.wait (%p768_p2), %s561_s6, 32  }
  0xdc   : > { %1043 = vsyncadd (%p768_p2), %s561_s6, 4294967264  ;;  %s31_s23 = sadd.s32 1, %s1066_s23   ;;  %s1442_s8 = sld [smem:[#allocation18_spill]] }
  0xdd   : > { %p28_p9 = scmp.ge.s32.totalorder %s31_s23, 4   ;;  %s1443_s20 = sld [smem:[#allocation20_spill]] }
  0xde   : > { %s1444_s16 = sld [smem:[#allocation19_spill]]  ;;  %s1445_s18 = smov %s1050_s19 }
  0xdf   : > { %s1447_s21 = smov %s1062_s22 }
  0xe0   :  { %30 = sbr.rel (!%p28_p9) target bundleno = 14 (0xe), region = 139 }
  0xe2   : > { %s1446_s19 = smov %s1442_s8 }
  0xe4   : > { %s1448_s22 = smov %s1444_s16 }
  0xe5   :  { %566 = vsyncpa [#allocation3], 1 }
  0xe6   :  { %568 = vsyncpa [#allocation3 + $0x1], 1 }
  0xe7   :  { %569 = vsyncpa [#allocation6], 1 }
  0xe8   :  { %571 = vsyncpa [#allocation6 + $0x1], 1 }
  0xe9   :  { %572 = vsyncpa [#allocation4], 1 }
  0xea   :  { %574 = vsyncpa [#allocation4 + $0x1], 1 }
  0xeb   :  { %575 = vsyncpa [#allocation9], 1 }
  0xec   :  { %577 = vsyncpa [#allocation9 + $0x1], 1 }
  0xed   :  { %578 = vsyncpa [#allocation12], 1 }
  0xee   :  { %580 = vsyncpa [#allocation12 + $0x1], 1 }

</bundles_post_ra>
